<compile_context>
chip_gen: v5e
topology: v5e:2x2
jax: 0.10.0
libtpu: 0.0.40
codegen_flags: <defaults>
</compile_context>

<pallas_src>
from functools import partial

import jax
import jax.numpy as jnp
from jax.experimental import pallas as pl
from jax.experimental.pallas import tpu as pltpu


# ---------------------------------------------------------------------------
# Tiled, pipelined matmul + bias Pallas kernel
# ---------------------------------------------------------------------------
def _matmul_bias_kernel(a_ref, w_ref, b_ref, o_ref, acc_ref):
    """o = a @ w + b ; bf16 MXU inputs, f32 accumulation in VMEM scratch."""
    k = pl.program_id(2)

    @pl.when(k == 0)
    def _init():
        acc_ref[...] = jnp.zeros_like(acc_ref)

    a = a_ref[...].astype(jnp.bfloat16)
    w = w_ref[...].astype(jnp.bfloat16)
    acc_ref[...] += jnp.dot(a, w, preferred_element_type=jnp.float32)

    @pl.when(k == pl.num_programs(2) - 1)
    def _finalize():
        o_ref[...] = (acc_ref[...] + b_ref[...].astype(jnp.float32)
                      ).astype(o_ref.dtype)


def _pick_tile(size, target, align):
    """Largest tile <= target that is a multiple of `align` and divides `size`;
    falls back to the full dimension (always legal for BlockSpec)."""
    if size <= target:
        return size
    t = (target // align) * align
    while t >= align:
        if size % t == 0:
            return t
        t -= align
    return size


def fused_matmul_bias(a, w, b, *, tm=256, tn=512, tk=512):
    """out = a @ w + b with a tiled / double-buffered Pallas kernel.

    a: (M, K), w: (K, N), b: (N,)  ->  (M, N) float32.
    """
    M, K = a.shape
    Kw, N = w.shape
    assert K == Kw, (K, Kw)

    tm = _pick_tile(M, tm, 8)     # sublane axis: multiple of 8 (or full)
    tn = _pick_tile(N, tn, 128)   # lane axis:   multiple of 128 (or full)
    tk = _pick_tile(K, tk, 128)   # contraction: lane of A / sublane of W

    grid = (M // tm, N // tn, K // tk)
    b2 = b.reshape(1, N)

    return pl.pallas_call(
        _matmul_bias_kernel,
        out_shape=jax.ShapeDtypeStruct((M, N), jnp.float32),
        grid_spec=pltpu.PrefetchScalarGridSpec(
            num_scalar_prefetch=0,
            grid=grid,
            in_specs=[
                pl.BlockSpec((tm, tk), lambda i, j, k: (i, k)),
                pl.BlockSpec((tk, tn), lambda i, j, k: (k, j)),
                pl.BlockSpec((1, tn), lambda i, j, k: (0, j)),
            ],
            out_specs=pl.BlockSpec((tm, tn), lambda i, j, k: (i, j)),
            scratch_shapes=[pltpu.VMEM((tm, tn), jnp.float32)],
        ),
        compiler_params=pltpu.CompilerParams(
            dimension_semantics=("parallel", "parallel", "arbitrary"),
            vmem_limit_bytes=32 * 1024 * 1024,
        ),
    )(a, w, b2)


# ---------------------------------------------------------------------------
# Parameter prep (one-time, outside the jit hot path)
# ---------------------------------------------------------------------------
def prepare_params(params):
    """Pre-transpose and fuse the projection weights.

    params holds PyTorch-layout weights: to_*_w is (out_features, in_features).
    """
    w_q = params['to_q_w'].T                                     # (C, Dq)
    w_kv = jnp.concatenate([params['to_k_w'].T,
                            params['to_v_w'].T], axis=1)         # (C, Dk+Dv)
    w_qkv = jnp.concatenate([w_q, w_kv], axis=1)                 # (C, Dq+Dk+Dv)
    b_q = params['to_q_b']
    b_kv = jnp.concatenate([params['to_k_b'], params['to_v_b']])
    b_qkv = jnp.concatenate([b_q, b_kv])
    return {'w_q': w_q, 'b_q': b_q,
            'w_kv': w_kv, 'b_kv': b_kv,
            'w_qkv': w_qkv, 'b_qkv': b_qkv}


# ---------------------------------------------------------------------------
# LinearProjection forward
# ---------------------------------------------------------------------------
def linear_projection_forward(prep, x, attn_kv, heads):
    B_, N, C = x.shape
    hd = C // heads
    hd2 = hd // 2
    d_q = heads * hd2          # to_q / to_k output features (inner_dim // 2)
    d_k = heads * hd2
    d_v = heads * hd           # to_v output features        (inner_dim)

    if attn_kv is None:
        # Self case: q, k, v all read x -> one fused matmul, x read from HBM
        # once, lane-dense output slab (d_q + d_k + d_v lanes).
        N_kv = N
        qkv = fused_matmul_bias(x.reshape(B_ * N, C),
                                prep['w_qkv'], prep['b_qkv'])
        q2d = qkv[:, :d_q]
        k2d = qkv[:, d_q:d_q + d_k]
        v2d = qkv[:, d_q + d_k:]
    else:
        N_kv = attn_kv.shape[1]
        # q on x; k and v fused into one matmul on attn_kv (single HBM read).
        q2d = fused_matmul_bias(x.reshape(B_ * N, C),
                                prep['w_q'], prep['b_q'])
        kv2d = fused_matmul_bias(attn_kv.reshape(B_ * N_kv, C),
                                 prep['w_kv'], prep['b_kv'])
        k2d = kv2d[:, :d_k]
        v2d = kv2d[:, d_k:]

    # Head split / permute: this layout IS the module's output contract
    # (torch reshape(...).permute(2,0,3,1,4)); pure layout, no math -> XLA.
    q = q2d.reshape(B_, N, heads, hd2).transpose(0, 2, 1, 3)            # (B, h, N, hd2)
    k = k2d.reshape(B_, N_kv, heads, hd2).transpose(0, 2, 1, 3)[None]   # (1, B, h, Nkv, hd2)
    v = v2d.reshape(B_, N_kv, heads, hd).transpose(0, 2, 1, 3)[None]    # (1, B, h, Nkv, hd)
    return q, k, v


# ---------------------------------------------------------------------------
# Pure-JAX reference (mirrors the PyTorch module op-for-op)
# ---------------------------------------------------------------------------
def reference_forward(params, x, attn_kv, heads):
    if attn_kv is None:
        attn_kv = x
    B_, N, C = x.shape
    N_kv = attn_kv.shape[1]
    hp = jax.lax.Precision.HIGHEST

    def linear(z, w, b):
        return jnp.matmul(z, w.T, precision=hp) + b

    q = linear(x, params['to_q_w'], params['to_q_b'])
    k = linear(attn_kv, params['to_k_w'], params['to_k_b'])
    v = linear(attn_kv, params['to_v_w'], params['to_v_b'])
    q = q.reshape(B_, N, 1, heads, C // heads // 2).transpose(2, 0, 3, 1, 4)[0]
    k = k.reshape(B_, N_kv, 1, heads, C // heads // 2).transpose(2, 0, 3, 1, 4)
    v = v.reshape(B_, N_kv, 1, heads, C // heads).transpose(2, 0, 3, 1, 4)
    return q, k, v


# ---------------------------------------------------------------------------
# main
# ---------------------------------------------------------------------------
if __name__ == "__main__":
    B, N, N_kv = 2, 64, 64
    dim, heads, dim_head = 32, 4, 8          # inner_dim = 32
    inner = heads * dim_head

    key = jax.random.PRNGKey(0)
    ks = jax.random.split(key, 8)

    def init(k, shape, s=0.1):
        return (s * jax.random.normal(k, shape)).astype(jnp.float32)

    params = {
        'to_q_w': init(ks[0], (inner // 2, dim)),
        'to_q_b': init(ks[1], (inner // 2,)),
        'to_k_w': init(ks[2], (inner // 2, dim)),
        'to_k_b': init(ks[3], (inner // 2,)),
        'to_v_w': init(ks[4], (inner, dim)),
        'to_v_b': init(ks[5], (inner,)),
    }
    x = jax.random.normal(ks[6], (B, N, dim), jnp.float32)
    attn_kv = jax.random.normal(ks[7], (B, N_kv, dim), jnp.float32)

    prep = prepare_params(params)            # one-time weight fuse/transpose

    def check(got, ref, name):
        # Tolerance covers bf16 MXU inputs vs. f32 HIGHEST-precision reference.
        for g, r in zip(got, ref):
            assert g.shape == r.shape, (name, g.shape, r.shape)
            err = float(jnp.max(jnp.abs(g - r)))
            assert bool(jnp.allclose(g, r, atol=3e-2, rtol=3e-2)), (name, err)

    # Cross case (explicit attn_kv): q matmul + fused k/v matmul.
    fwd_cross = jax.jit(partial(linear_projection_forward, heads=heads))
    out_cross = jax.block_until_ready(fwd_cross(prep, x, attn_kv))
    check(out_cross, reference_forward(params, x, attn_kv, heads), "cross")

    # Self case (attn_kv=None): single fused q/k/v matmul.
    fwd_self = jax.jit(partial(linear_projection_forward,
                               attn_kv=None, heads=heads))
    out_self = jax.block_until_ready(fwd_self(prep, x))
    check(out_self, reference_forward(params, x, None, heads), "self")

    print("KERNEL_OK")
</pallas_src>

<mosaic_0001>
module attributes {stable_mosaic.version = 11 : i64} {
  func.func @_matmul_bias_kernel(%arg0: i32, %arg1: i32, %arg2: i32, %arg3: memref<128x32xf32, #tpu.memory_space<vmem>>, %arg4: memref<32x16xf32, #tpu.memory_space<vmem>>, %arg5: memref<1x16xf32, #tpu.memory_space<vmem>>, %arg6: memref<128x16xf32, #tpu.memory_space<vmem>>, %arg7: memref<128x16xf32, #tpu.memory_space<vmem>>) attributes {dimension_semantics = [#tpu.dimension_semantics<parallel>, #tpu.dimension_semantics<parallel>, #tpu.dimension_semantics<arbitrary>], iteration_bounds = array<i64: 1, 1, 1>, scalar_prefetch = 0 : i64, scratch_operands = 1 : i64, tpu.core_type = #tpu.core_type<tc>, window_params = [{transform_indices = @transform_0, window_bounds = array<i64: 128, 32>}, {transform_indices = @transform_1, window_bounds = array<i64: 32, 16>}, {transform_indices = @transform_2, window_bounds = array<i64: 1, 16>}, {transform_indices = @transform_3, window_bounds = array<i64: 128, 16>}]} {
    %c0_i32 = arith.constant 0 : i32
    %0 = arith.cmpi eq, %arg2, %c0_i32 : i32
    %1 = arith.extui %0 : i1 to i32
    %c0_i32_0 = arith.constant 0 : i32
    %2 = arith.cmpi ne, %1, %c0_i32_0 : i32
    scf.if %2 {
      %cst_10 = arith.constant 0.000000e+00 : f32
      %14 = vector.broadcast %cst_10 : f32 to vector<128x16xf32>
      %c0_11 = arith.constant 0 : index
      %c0_12 = arith.constant 0 : index
      %15 = vector.load %arg7[%c0_11, %c0_12] : memref<128x16xf32, #tpu.memory_space<vmem>>, vector<128x16xf32>
      tpu.vector_store %arg7[%c0_11, %c0_12], %14 {strides = array<i32>} : memref<128x16xf32, #tpu.memory_space<vmem>>, vector<128x16xf32>,
    } else {
    }
    %c0 = arith.constant 0 : index
    %c0_1 = arith.constant 0 : index
    %3 = vector.load %arg3[%c0, %c0_1] : memref<128x32xf32, #tpu.memory_space<vmem>>, vector<128x32xf32>
    %4 = arith.truncf %3 : vector<128x32xf32> to vector<128x32xbf16>
    %c0_2 = arith.constant 0 : index
    %c0_3 = arith.constant 0 : index
    %5 = vector.load %arg4[%c0_2, %c0_3] : memref<32x16xf32, #tpu.memory_space<vmem>>, vector<32x16xf32>
    %6 = arith.truncf %5 : vector<32x16xf32> to vector<32x16xbf16>
    %c0_4 = arith.constant 0 : index
    %c0_5 = arith.constant 0 : index
    %7 = vector.load %arg7[%c0_4, %c0_5] : memref<128x16xf32, #tpu.memory_space<vmem>>, vector<128x16xf32>
    %cst = arith.constant dense<0.000000e+00> : vector<128x16xf32>
    %8 = tpu.matmul %4, %6, %cst {dimension_numbers = #tpu.dot_dimension_numbers<[1], [0], [0], [1], [0, 0, 1, 1], [], []>} : vector<128x32xbf16>, vector<32x16xbf16>, vector<128x16xf32> -> vector<128x16xf32>
    %9 = arith.addf %7, %8 : vector<128x16xf32>
    %c0_6 = arith.constant 0 : index
    %c0_7 = arith.constant 0 : index
    %10 = vector.load %arg7[%c0_6, %c0_7] : memref<128x16xf32, #tpu.memory_space<vmem>>, vector<128x16xf32>
    tpu.vector_store %arg7[%c0_6, %c0_7], %9 {strides = array<i32>} : memref<128x16xf32, #tpu.memory_space<vmem>>, vector<128x16xf32>,
    %c0_i32_8 = arith.constant 0 : i32
    %11 = arith.cmpi eq, %arg2, %c0_i32_8 : i32
    %12 = arith.extui %11 : i1 to i32
    %c0_i32_9 = arith.constant 0 : i32
    %13 = arith.cmpi ne, %12, %c0_i32_9 : i32
    scf.if %13 {
      %c0_10 = arith.constant 0 : index
      %c0_11 = arith.constant 0 : index
      %14 = vector.load %arg7[%c0_10, %c0_11] : memref<128x16xf32, #tpu.memory_space<vmem>>, vector<128x16xf32>
      %c0_12 = arith.constant 0 : index
      %c0_13 = arith.constant 0 : index
      %15 = vector.load %arg5[%c0_12, %c0_13] : memref<1x16xf32, #tpu.memory_space<vmem>>, vector<1x16xf32>
      %16 = vector.broadcast %15 : vector<1x16xf32> to vector<128x16xf32>
      %17 = arith.addf %14, %16 : vector<128x16xf32>
      %c0_14 = arith.constant 0 : index
      %c0_15 = arith.constant 0 : index
      %18 = vector.load %arg6[%c0_14, %c0_15] : memref<128x16xf32, #tpu.memory_space<vmem>>, vector<128x16xf32>
      tpu.vector_store %arg6[%c0_14, %c0_15], %17 {strides = array<i32>} : memref<128x16xf32, #tpu.memory_space<vmem>>, vector<128x16xf32>,
    } else {
    }
    return
  }
  func.func @transform_0(%arg0: i32, %arg1: i32, %arg2: i32) -> (i32, i32) {
    %c0_i32 = arith.constant 0 : i32
    return %arg0, %arg2 : i32, i32
  }
  func.func @transform_1(%arg0: i32, %arg1: i32, %arg2: i32) -> (i32, i32) {
    %c0_i32 = arith.constant 0 : i32
    return %arg2, %arg1 : i32, i32
  }
  func.func @transform_2(%arg0: i32, %arg1: i32, %arg2: i32) -> (i32, i32) {
    %c0_i32 = arith.constant 0 : i32
    %c0_i32_0 = arith.constant 0 : i32
    return %c0_i32, %arg1 : i32, i32
  }
  func.func @transform_3(%arg0: i32, %arg1: i32, %arg2: i32) -> (i32, i32) {
    %c0_i32 = arith.constant 0 : i32
    return %arg0, %arg1 : i32, i32
  }
}

module attributes {stable_mosaic.version = 11 : i64} {
  func.func @_matmul_bias_kernel(%arg0: i32, %arg1: i32, %arg2: i32, %arg3: memref<128x32xf32, #tpu.memory_space<vmem>>, %arg4: memref<32x48xf32, #tpu.memory_space<vmem>>, %arg5: memref<1x48xf32, #tpu.memory_space<vmem>>, %arg6: memref<128x48xf32, #tpu.memory_space<vmem>>, %arg7: memref<128x48xf32, #tpu.memory_space<vmem>>) attributes {dimension_semantics = [#tpu.dimension_semantics<parallel>, #tpu.dimension_semantics<parallel>, #tpu.dimension_semantics<arbitrary>], iteration_bounds = array<i64: 1, 1, 1>, scalar_prefetch = 0 : i64, scratch_operands = 1 : i64, tpu.core_type = #tpu.core_type<tc>, window_params = [{transform_indices = @transform_0, window_bounds = array<i64: 128, 32>}, {transform_indices = @transform_1, window_bounds = array<i64: 32, 48>}, {transform_indices = @transform_2, window_bounds = array<i64: 1, 48>}, {transform_indices = @transform_3, window_bounds = array<i64: 128, 48>}]} {
    %c0_i32 = arith.constant 0 : i32
    %0 = arith.cmpi eq, %arg2, %c0_i32 : i32
    %1 = arith.extui %0 : i1 to i32
    %c0_i32_0 = arith.constant 0 : i32
    %2 = arith.cmpi ne, %1, %c0_i32_0 : i32
    scf.if %2 {
      %cst_10 = arith.constant 0.000000e+00 : f32
      %14 = vector.broadcast %cst_10 : f32 to vector<128x48xf32>
      %c0_11 = arith.constant 0 : index
      %c0_12 = arith.constant 0 : index
      %15 = vector.load %arg7[%c0_11, %c0_12] : memref<128x48xf32, #tpu.memory_space<vmem>>, vector<128x48xf32>
      tpu.vector_store %arg7[%c0_11, %c0_12], %14 {strides = array<i32>} : memref<128x48xf32, #tpu.memory_space<vmem>>, vector<128x48xf32>,
    } else {
    }
    %c0 = arith.constant 0 : index
    %c0_1 = arith.constant 0 : index
    %3 = vector.load %arg3[%c0, %c0_1] : memref<128x32xf32, #tpu.memory_space<vmem>>, vector<128x32xf32>
    %4 = arith.truncf %3 : vector<128x32xf32> to vector<128x32xbf16>
    %c0_2 = arith.constant 0 : index
    %c0_3 = arith.constant 0 : index
    %5 = vector.load %arg4[%c0_2, %c0_3] : memref<32x48xf32, #tpu.memory_space<vmem>>, vector<32x48xf32>
    %6 = arith.truncf %5 : vector<32x48xf32> to vector<32x48xbf16>
    %c0_4 = arith.constant 0 : index
    %c0_5 = arith.constant 0 : index
    %7 = vector.load %arg7[%c0_4, %c0_5] : memref<128x48xf32, #tpu.memory_space<vmem>>, vector<128x48xf32>
    %cst = arith.constant dense<0.000000e+00> : vector<128x48xf32>
    %8 = tpu.matmul %4, %6, %cst {dimension_numbers = #tpu.dot_dimension_numbers<[1], [0], [0], [1], [0, 0, 1, 1], [], []>} : vector<128x32xbf16>, vector<32x48xbf16>, vector<128x48xf32> -> vector<128x48xf32>
    %9 = arith.addf %7, %8 : vector<128x48xf32>
    %c0_6 = arith.constant 0 : index
    %c0_7 = arith.constant 0 : index
    %10 = vector.load %arg7[%c0_6, %c0_7] : memref<128x48xf32, #tpu.memory_space<vmem>>, vector<128x48xf32>
    tpu.vector_store %arg7[%c0_6, %c0_7], %9 {strides = array<i32>} : memref<128x48xf32, #tpu.memory_space<vmem>>, vector<128x48xf32>,
    %c0_i32_8 = arith.constant 0 : i32
    %11 = arith.cmpi eq, %arg2, %c0_i32_8 : i32
    %12 = arith.extui %11 : i1 to i32
    %c0_i32_9 = arith.constant 0 : i32
    %13 = arith.cmpi ne, %12, %c0_i32_9 : i32
    scf.if %13 {
      %c0_10 = arith.constant 0 : index
      %c0_11 = arith.constant 0 : index
      %14 = vector.load %arg7[%c0_10, %c0_11] : memref<128x48xf32, #tpu.memory_space<vmem>>, vector<128x48xf32>
      %c0_12 = arith.constant 0 : index
      %c0_13 = arith.constant 0 : index
      %15 = vector.load %arg5[%c0_12, %c0_13] : memref<1x48xf32, #tpu.memory_space<vmem>>, vector<1x48xf32>
      %16 = vector.broadcast %15 : vector<1x48xf32> to vector<128x48xf32>
      %17 = arith.addf %14, %16 : vector<128x48xf32>
      %c0_14 = arith.constant 0 : index
      %c0_15 = arith.constant 0 : index
      %18 = vector.load %arg6[%c0_14, %c0_15] : memref<128x48xf32, #tpu.memory_space<vmem>>, vector<128x48xf32>
      tpu.vector_store %arg6[%c0_14, %c0_15], %17 {strides = array<i32>} : memref<128x48xf32, #tpu.memory_space<vmem>>, vector<128x48xf32>,
    } else {
    }
    return
  }
  func.func @transform_0(%arg0: i32, %arg1: i32, %arg2: i32) -> (i32, i32) {
    %c0_i32 = arith.constant 0 : i32
    return %arg0, %arg2 : i32, i32
  }
  func.func @transform_1(%arg0: i32, %arg1: i32, %arg2: i32) -> (i32, i32) {
    %c0_i32 = arith.constant 0 : i32
    return %arg2, %arg1 : i32, i32
  }
  func.func @transform_2(%arg0: i32, %arg1: i32, %arg2: i32) -> (i32, i32) {
    %c0_i32 = arith.constant 0 : i32
    %c0_i32_0 = arith.constant 0 : i32
    return %c0_i32, %arg1 : i32, i32
  }
  func.func @transform_3(%arg0: i32, %arg1: i32, %arg2: i32) -> (i32, i32) {
    %c0_i32 = arith.constant 0 : i32
    return %arg0, %arg1 : i32, i32
  }
}

</mosaic_0001>

<bundles_post_ra>
// kernel: linear_projection_forward.3
= control target key start
LH: loop header
LB: loop body
LE: loop exit
PB: predicated region body
PF: predicated region fallthrough
CT: control target
= control target key end

     0   :  { %vm19_vm0 = vcmask 392192   ;;  %v264_v3 = vmov 0.0   ;;  %vm82_vm1 = vcmask 261120   ;;  %s470_s1 = inlined_call_operand.vmem [shape: f32[32,48], index: 1, kind: input, shape index: {}]   ;;  %s471_s0 = inlined_call_operand.vmem [shape: f32[128,32], index: 0, kind: input, shape index: {}]   ;;  %s472_s2 = inlined_call_operand.vmem [shape: f32[1,48], index: 2, kind: input, shape index: {}]   ;;  %s473_s3 = inlined_call_operand.vmem [shape: f32[128,48], index: 3, kind: output, shape index: {}]  }
   0x1   :  { %v62_v0 = vld [vmem:[%s470_s1 + $0x10] sm:$0xff]  ;;  %v63_v1 = vld [vmem:[%s470_s1 + $0x18] sm:$0xff]  ;;  %v60_v2 = vld [vmem:[%s470_s1] sm:$0xff]  ;;  %20 = vst.msk [vmem:[#allocation2] sm:$0xff] %vm19_vm0, %v264_v3 }
   0x2   :  { %v65_v4 = vpack.c.bf16 %v63_v1, %v62_v0  ;;  %v61_v5 = vld [vmem:[%s470_s1 + $0x8] sm:$0xff]  ;;  %21 = vst.msk [vmem:[#allocation2 + $0x8] sm:$0xff] %vm19_vm0, %v264_v3  ;;  %v36_v6 = vld [vmem:[%s471_s0] sm:$0xff]  ;;  %v38_v19 = vld [vmem:[%s471_s0 + $0x10] sm:$0xff] }
   0x3   :  { %v37_v7 = vld [vmem:[%s471_s0 + $0x8] sm:$0xff]  ;;  %22 = vst.msk [vmem:[#allocation2 + $0x10] sm:$0xff] %vm19_vm0, %v264_v3  ;;  %v64_v8 = vpack.c.bf16 %v61_v5, %v60_v2  ;;  %v40_v9 = vld [vmem:[%s471_s0 + $0x20] sm:$0xff]  ;;  %v39_v20 = vld [vmem:[%s471_s0 + $0x18] sm:$0xff] }
   0x4   :  { %113 = vmatpush.bf16.msra.mxu0 %v65_v4  ;;  %256 = vmatpush.bf16.msra.mxu1 %v65_v4  ;;  %v41_v10 = vld [vmem:[%s471_s0 + $0x28] sm:$0xff]  ;;  %v44_v11 = vld [vmem:[%s471_s0 + $0x40] sm:$0xff]  ;;  %23 = vst.msk [vmem:[#allocation2 + $0x18] sm:$0xff] %vm19_vm0, %v264_v3  ;;  %v52_v15 = vpack.c.bf16 %v37_v7, %v36_v6  ;;  %v42_v21 = vld [vmem:[%s471_s0 + $0x30] sm:$0xff]  ;;  %v53_v27 = vpack.c.bf16 %v39_v20, %v38_v19 }
   0x5   :  { %257 = vmatpush.bf16.msra.mxu2 %v65_v4  ;;  %258 = vmatpush.bf16.msra.mxu3 %v65_v4  ;;  %v45_v12 = vld [vmem:[%s471_s0 + $0x48] sm:$0xff]  ;;  %v48_v13 = vld [vmem:[%s471_s0 + $0x60] sm:$0xff]  ;;  %24 = vst.msk [vmem:[#allocation2 + $0x20] sm:$0xff] %vm19_vm0, %v264_v3  ;;  %v54_v16 = vpack.c.bf16 %v41_v10, %v40_v9  ;;  %v43_v22 = vld [vmem:[%s471_s0 + $0x38] sm:$0xff] }
   0x6   :  { %v49_v14 = vld [vmem:[%s471_s0 + $0x68] sm:$0xff]  ;;  %25 = vst.msk [vmem:[#allocation2 + $0x28] sm:$0xff] %vm19_vm0, %v264_v3  ;;  %v56_v17 = vpack.c.bf16 %v45_v12, %v44_v11  ;;  %v46_v23 = vld [vmem:[%s471_s0 + $0x50] sm:$0xff]  ;;  %v47_v24 = vld [vmem:[%s471_s0 + $0x58] sm:$0xff]  ;;  %v55_v28 = vpack.c.bf16 %v43_v22, %v42_v21 }
   0x7   :  { %26 = vst.msk [vmem:[#allocation2 + $0x30] sm:$0xff] %vm19_vm0, %v264_v3  ;;  %v58_v18 = vpack.c.bf16 %v49_v14, %v48_v13  ;;  %v50_v25 = vld [vmem:[%s471_s0 + $0x70] sm:$0xff]  ;;  %v51_v26 = vld [vmem:[%s471_s0 + $0x78] sm:$0xff]  ;;  %v57_v29 = vpack.c.bf16 %v47_v24, %v46_v23  ;;  %v374_v40 = vld [vmem:[%s472_s2] ss:$0 sm:$0xff] }
   0x8   :  { %114 = vmatpush.bf16.msra.mxu0 %v64_v8  ;;  %259 = vmatpush.bf16.msra.mxu1 %v64_v8  ;;  %27 = vst.msk [vmem:[#allocation2 + $0x38] sm:$0xff] %vm19_vm0, %v264_v3  ;;  %v59_v30 = vpack.c.bf16 %v51_v26, %v50_v25  ;;  %v66_v31 = vld [vmem:[#allocation2] sm:$0xff] }
   0x9   :  { %260 = vmatpush.bf16.msra.mxu2 %v64_v8  ;;  %261 = vmatpush.bf16.msra.mxu3 %v64_v8  ;;  %28 = vst.msk [vmem:[#allocation2 + $0x40] sm:$0xff] %vm19_vm0, %v264_v3  ;;  %v67_v39 = vld [vmem:[#allocation2 + $0x8] sm:$0xff] }
   0xa   :  { %29 = vst.msk [vmem:[#allocation2 + $0x48] sm:$0xff] %vm19_vm0, %v264_v3  ;;  %v68_v60 = vld [vmem:[#allocation2 + $0x10] sm:$0xff] }
   0xb   :  { %248 = vmatmul.msk.bf16.vlgmr.msra.gmra.mxu0 %vm82_vm1, %v52_v15  ;;  %250 = vmatmul.msk.bf16.vlgmr.msra.gmra.mxu1 %vm82_vm1, %v54_v16  ;;  %30 = vst.msk [vmem:[#allocation2 + $0x50] sm:$0xff] %vm19_vm0, %v264_v3  ;;  %v69_v14 = vld [vmem:[#allocation2 + $0x18] sm:$0xff] }
   0xc   :  { %252 = vmatmul.msk.bf16.vlgmr.msra.gmra.mxu2 %vm82_vm1, %v56_v17  ;;  %254 = vmatmul.msk.bf16.vlgmr.msra.gmra.mxu3 %vm82_vm1, %v58_v18  ;;  %31 = vst.msk [vmem:[#allocation2 + $0x58] sm:$0xff] %vm19_vm0, %v264_v3  ;;  %v70_v32 = vld [vmem:[#allocation2 + $0x20] sm:$0xff] }
   0xd   :  { %32 = vst.msk [vmem:[#allocation2 + $0x60] sm:$0xff] %vm19_vm0, %v264_v3  ;;  %v71_v46 = vld [vmem:[#allocation2 + $0x28] sm:$0xff] }
   0xe   :  { %33 = vst.msk [vmem:[#allocation2 + $0x68] sm:$0xff] %vm19_vm0, %v264_v3  ;;  %v72_v0 = vld [vmem:[#allocation2 + $0x30] sm:$0xff] }
   0xf   :  { %34 = vst.msk [vmem:[#allocation2 + $0x70] sm:$0xff] %vm19_vm0, %v264_v3  ;;  %v73_v18 = vld [vmem:[#allocation2 + $0x38] sm:$0xff] }
  0x10   :  { %35 = vst.msk [vmem:[#allocation2 + $0x78] sm:$0xff] %vm19_vm0, %v264_v3  ;;  %v74_v37 = vld [vmem:[#allocation2 + $0x40] sm:$0xff] }
  0x11   :  { %v75_v54 = vld [vmem:[#allocation2 + $0x48] sm:$0xff] }
  0x12   :  { %v76_v8 = vld [vmem:[#allocation2 + $0x50] sm:$0xff] }
  0x13   :  { %v77_v26 = vld [vmem:[#allocation2 + $0x58] sm:$0xff] }
  0x14   :  { %v78_v38 = vld [vmem:[#allocation2 + $0x60] sm:$0xff] }
  0x15   :  { %v79_v55 = vld [vmem:[#allocation2 + $0x68] sm:$0xff] }
  0x16   :  { %v80_v9 = vld [vmem:[#allocation2 + $0x70] sm:$0xff] }
  0x1b   :  { %249 = vmatmul.msk.bf16.gmra.mxu0 %vm82_vm1, %v53_v27  ;;  %251 = vmatmul.msk.bf16.gmra.mxu1 %vm82_vm1, %v55_v28 }
  0x1c   :  { %253 = vmatmul.msk.bf16.gmra.mxu2 %vm82_vm1, %v57_v29  ;;  %255 = vmatmul.msk.bf16.gmra.mxu3 %vm82_vm1, %v59_v30 }
  0x88   :  { %v116_v33 = vpop.f32.mrf.mxu0  ;;  %v126_v34 = vpop.f32.mrf.mxu1 }
  0x89   :  { %v156_v35 = vadd.f32 %v116_v33, %v66_v31  ;;  %v160_v36 = vadd.f32 %v126_v34, %v70_v32  ;;  %v81_v31 = vld [vmem:[#allocation2 + $0x78] sm:$0xff] }
  0x8b   :  { %173 = vst.msk [vmem:[#allocation2] sm:$0xff] %vm19_vm0, %v156_v35 }
  0x8c   :  { %177 = vst.msk [vmem:[#allocation2 + $0x20] sm:$0xff] %vm19_vm0, %v160_v36 }
  0x8f   :  { %v136_v41 = vpop.f32.mrf.mxu2  ;;  %v146_v42 = vpop.f32.mrf.mxu3 }
  0x90   :  { %v164_v43 = vadd.f32 %v136_v41, %v74_v37  ;;  %v168_v44 = vadd.f32 %v146_v42, %v78_v38  ;;  %v118_v45 = vpop.f32.mrf.mxu0  ;;  %v128_v47 = vpop.f32.mrf.mxu1 }
  0x91   :  { %v157_v48 = vadd.f32 %v118_v45, %v67_v39  ;;  %v161_v52 = vadd.f32 %v128_v47, %v71_v46 }
  0x92   :  { %v192_v49 = vld [vmem:[#allocation2] sm:$0xff]  ;;  %181 = vst.msk [vmem:[#allocation2 + $0x40] sm:$0xff] %vm19_vm0, %v164_v43 }
  0x93   :  { %v212_v50 = vadd.f32 %v374_v40, %v192_v49  ;;  %v196_v51 = vld [vmem:[#allocation2 + $0x20] sm:$0xff]  ;;  %185 = vst.msk [vmem:[#allocation2 + $0x60] sm:$0xff] %vm19_vm0, %v168_v44 }
  0x94   :  { %v216_v53 = vadd.f32 %v374_v40, %v196_v51  ;;  %174 = vst.msk [vmem:[#allocation2 + $0x8] sm:$0xff] %vm19_vm0, %v157_v48 }
  0x95   :  { %228 = vst.msk [vmem:[%s473_s3] sm:$0xff] %vm19_vm0, %v212_v50 }
  0x96   :  { %232 = vst.msk [vmem:[%s473_s3 + $0x20] sm:$0xff] %vm19_vm0, %v216_v53 }
  0x97   :  { %178 = vst.msk [vmem:[#allocation2 + $0x28] sm:$0xff] %vm19_vm0, %v161_v52  ;;  %v138_v56 = vpop.f32.mrf.mxu2  ;;  %v148_v57 = vpop.f32.mrf.mxu3 }
  0x98   :  { %v165_v58 = vadd.f32 %v138_v56, %v75_v54  ;;  %v169_v59 = vadd.f32 %v148_v57, %v79_v55  ;;  %v121_v61 = vpop.f32.mrf.mxu0  ;;  %v131_v62 = vpop.f32.mrf.mxu1 }
  0x99   :  { %v200_v63 = vld [vmem:[#allocation2 + $0x40] sm:$0xff]  ;;  %v158_v5 = vadd.f32 %v121_v61, %v68_v60  ;;  %v162_v7 = vadd.f32 %v131_v62, %v72_v0 }
  0x9a   :  { %v220_v1 = vadd.f32 %v374_v40, %v200_v63  ;;  %v204_v2 = vld [vmem:[#allocation2 + $0x60] sm:$0xff]  ;;  %182 = vst.msk [vmem:[#allocation2 + $0x48] sm:$0xff] %vm19_vm0, %v165_v58 }
  0x9b   :  { %v224_v3 = vadd.f32 %v374_v40, %v204_v2  ;;  %v193_v4 = vld [vmem:[#allocation2 + $0x8] sm:$0xff]  ;;  %186 = vst.msk [vmem:[#allocation2 + $0x68] sm:$0xff] %vm19_vm0, %v169_v59 }
  0x9c   :  { %236 = vst.msk [vmem:[%s473_s3 + $0x40] sm:$0xff] %vm19_vm0, %v220_v1  ;;  %v213_v6 = vadd.f32 %v374_v40, %v193_v4 }
  0x9d   :  { %240 = vst.msk [vmem:[%s473_s3 + $0x60] sm:$0xff] %vm19_vm0, %v224_v3 }
  0x9e   :  { %229 = vst.msk [vmem:[%s473_s3 + $0x8] sm:$0xff] %vm19_vm0, %v213_v6  ;;  %v197_v10 = vld [vmem:[#allocation2 + $0x28] sm:$0xff] }
  0x9f   :  { %v217_v11 = vadd.f32 %v374_v40, %v197_v10  ;;  %175 = vst.msk [vmem:[#allocation2 + $0x10] sm:$0xff] %vm19_vm0, %v158_v5  ;;  %v141_v12 = vpop.f32.mrf.mxu2  ;;  %v151_v13 = vpop.f32.mrf.mxu3 }
  0xa0   :  { %179 = vst.msk [vmem:[#allocation2 + $0x30] sm:$0xff] %vm19_vm0, %v162_v7  ;;  %v166_v15 = vadd.f32 %v141_v12, %v76_v8  ;;  %v170_v16 = vadd.f32 %v151_v13, %v80_v9  ;;  %v123_v17 = vpop.f32.mrf.mxu0  ;;  %v133_v19 = vpop.f32.mrf.mxu1 }
  0xa1   :  { %233 = vst.msk [vmem:[%s473_s3 + $0x28] sm:$0xff] %vm19_vm0, %v217_v11  ;;  %v201_v20 = vld [vmem:[#allocation2 + $0x48] sm:$0xff]  ;;  %v159_v23 = vadd.f32 %v123_v17, %v69_v14  ;;  %v163_v25 = vadd.f32 %v133_v19, %v73_v18 }
  0xa2   :  { %v221_v21 = vadd.f32 %v374_v40, %v201_v20  ;;  %v205_v22 = vld [vmem:[#allocation2 + $0x68] sm:$0xff]  ;;  %183 = vst.msk [vmem:[#allocation2 + $0x50] sm:$0xff] %vm19_vm0, %v166_v15 }
  0xa3   :  { %v225_v24 = vadd.f32 %v374_v40, %v205_v22  ;;  %187 = vst.msk [vmem:[#allocation2 + $0x70] sm:$0xff] %vm19_vm0, %v170_v16 }
  0xa4   :  { %237 = vst.msk [vmem:[%s473_s3 + $0x48] sm:$0xff] %vm19_vm0, %v221_v21 }
  0xa5   :  { %241 = vst.msk [vmem:[%s473_s3 + $0x68] sm:$0xff] %vm19_vm0, %v225_v24 }
  0xa6   :  { %v194_v27 = vld [vmem:[#allocation2 + $0x10] sm:$0xff]  ;;  %176 = vst.msk [vmem:[#allocation2 + $0x18] sm:$0xff] %vm19_vm0, %v159_v23 }
  0xa7   :  { %v214_v28 = vadd.f32 %v374_v40, %v194_v27  ;;  %v198_v29 = vld [vmem:[#allocation2 + $0x30] sm:$0xff]  ;;  %180 = vst.msk [vmem:[#allocation2 + $0x38] sm:$0xff] %vm19_vm0, %v163_v25  ;;  %v143_v30 = vpop.f32.mrf.mxu2  ;;  %v153_v32 = vpop.f32.mrf.mxu3 }
  0xa8   :  { %v218_v33 = vadd.f32 %v374_v40, %v198_v29  ;;  %v167_v34 = vadd.f32 %v143_v30, %v77_v26  ;;  %v171_v38 = vadd.f32 %v153_v32, %v81_v31 }
  0xa9   :  { %230 = vst.msk [vmem:[%s473_s3 + $0x10] sm:$0xff] %vm19_vm0, %v214_v28  ;;  %v202_v35 = vld [vmem:[#allocation2 + $0x50] sm:$0xff] }
  0xaa   :  { %234 = vst.msk [vmem:[%s473_s3 + $0x30] sm:$0xff] %vm19_vm0, %v218_v33  ;;  %v222_v36 = vadd.f32 %v374_v40, %v202_v35  ;;  %v206_v37 = vld [vmem:[#allocation2 + $0x70] sm:$0xff] }
  0xab   :  { %v226_v39 = vadd.f32 %v374_v40, %v206_v37  ;;  %184 = vst.msk [vmem:[#allocation2 + $0x58] sm:$0xff] %vm19_vm0, %v167_v34 }
  0xac   :  { %238 = vst.msk [vmem:[%s473_s3 + $0x50] sm:$0xff] %vm19_vm0, %v222_v36 }
  0xad   :  { %242 = vst.msk [vmem:[%s473_s3 + $0x70] sm:$0xff] %vm19_vm0, %v226_v39  ;;  %v195_v41 = vld [vmem:[#allocation2 + $0x18] sm:$0xff] }
  0xae   :  { %v215_v42 = vadd.f32 %v374_v40, %v195_v41  ;;  %v199_v43 = vld [vmem:[#allocation2 + $0x38] sm:$0xff]  ;;  %188 = vst.msk [vmem:[#allocation2 + $0x78] sm:$0xff] %vm19_vm0, %v171_v38 }
  0xaf   :  { %v219_v44 = vadd.f32 %v374_v40, %v199_v43 }
  0xb0   :  { %231 = vst.msk [vmem:[%s473_s3 + $0x18] sm:$0xff] %vm19_vm0, %v215_v42 }
  0xb1   :  { %235 = vst.msk [vmem:[%s473_s3 + $0x38] sm:$0xff] %vm19_vm0, %v219_v44 }
  0xb2   :  { %v203_v45 = vld [vmem:[#allocation2 + $0x58] sm:$0xff] }
  0xb3   :  { %v223_v46 = vadd.f32 %v374_v40, %v203_v45 }
  0xb5   :  { %239 = vst.msk [vmem:[%s473_s3 + $0x58] sm:$0xff] %vm19_vm0, %v223_v46  ;;  %v207_v47 = vld [vmem:[#allocation2 + $0x78] sm:$0xff] }
  0xb6   :  { %v227_v48 = vadd.f32 %v374_v40, %v207_v47 }
  0xb8   :  { %243 = vst.msk [vmem:[%s473_s3 + $0x78] sm:$0xff] %vm19_vm0, %v227_v48 }

// kernel: linear_projection_forward.2
= control target key start
LH: loop header
LB: loop body
LE: loop exit
PB: predicated region body
PF: predicated region fallthrough
CT: control target
= control target key end

     0   :  { %vm19_vm0 = vcmask 130048   ;;  %v264_v3 = vmov 0.0   ;;  %vm82_vm1 = vcmask 261120   ;;  %s470_s1 = inlined_call_operand.vmem [shape: f32[32,16], index: 1, kind: input, shape index: {}]   ;;  %s471_s0 = inlined_call_operand.vmem [shape: f32[128,32], index: 0, kind: input, shape index: {}]   ;;  %s472_s2 = inlined_call_operand.vmem [shape: f32[1,16], index: 2, kind: input, shape index: {}]   ;;  %s473_s3 = inlined_call_operand.vmem [shape: f32[128,16], index: 3, kind: output, shape index: {}]  }
   0x1   :  { %v62_v0 = vld [vmem:[%s470_s1 + $0x10] sm:$0xff]  ;;  %v63_v1 = vld [vmem:[%s470_s1 + $0x18] sm:$0xff]  ;;  %v60_v2 = vld [vmem:[%s470_s1] sm:$0xff]  ;;  %20 = vst.msk [vmem:[#allocation2] sm:$0xff] %vm19_vm0, %v264_v3 }
   0x2   :  { %v65_v4 = vpack.c.bf16 %v63_v1, %v62_v0  ;;  %v61_v5 = vld [vmem:[%s470_s1 + $0x8] sm:$0xff]  ;;  %21 = vst.msk [vmem:[#allocation2 + $0x8] sm:$0xff] %vm19_vm0, %v264_v3  ;;  %v36_v6 = vld [vmem:[%s471_s0] sm:$0xff]  ;;  %v38_v19 = vld [vmem:[%s471_s0 + $0x10] sm:$0xff] }
   0x3   :  { %v37_v7 = vld [vmem:[%s471_s0 + $0x8] sm:$0xff]  ;;  %22 = vst.msk [vmem:[#allocation2 + $0x10] sm:$0xff] %vm19_vm0, %v264_v3  ;;  %v64_v8 = vpack.c.bf16 %v61_v5, %v60_v2  ;;  %v40_v9 = vld [vmem:[%s471_s0 + $0x20] sm:$0xff]  ;;  %v39_v20 = vld [vmem:[%s471_s0 + $0x18] sm:$0xff] }
   0x4   :  { %113 = vmatpush.bf16.msra.mxu0 %v65_v4  ;;  %256 = vmatpush.bf16.msra.mxu1 %v65_v4  ;;  %v41_v10 = vld [vmem:[%s471_s0 + $0x28] sm:$0xff]  ;;  %v44_v11 = vld [vmem:[%s471_s0 + $0x40] sm:$0xff]  ;;  %23 = vst.msk [vmem:[#allocation2 + $0x18] sm:$0xff] %vm19_vm0, %v264_v3  ;;  %v52_v15 = vpack.c.bf16 %v37_v7, %v36_v6  ;;  %v42_v21 = vld [vmem:[%s471_s0 + $0x30] sm:$0xff]  ;;  %v53_v27 = vpack.c.bf16 %v39_v20, %v38_v19 }
   0x5   :  { %257 = vmatpush.bf16.msra.mxu2 %v65_v4  ;;  %258 = vmatpush.bf16.msra.mxu3 %v65_v4  ;;  %v45_v12 = vld [vmem:[%s471_s0 + $0x48] sm:$0xff]  ;;  %v48_v13 = vld [vmem:[%s471_s0 + $0x60] sm:$0xff]  ;;  %24 = vst.msk [vmem:[#allocation2 + $0x20] sm:$0xff] %vm19_vm0, %v264_v3  ;;  %v54_v16 = vpack.c.bf16 %v41_v10, %v40_v9  ;;  %v43_v22 = vld [vmem:[%s471_s0 + $0x38] sm:$0xff] }
   0x6   :  { %v49_v14 = vld [vmem:[%s471_s0 + $0x68] sm:$0xff]  ;;  %25 = vst.msk [vmem:[#allocation2 + $0x28] sm:$0xff] %vm19_vm0, %v264_v3  ;;  %v56_v17 = vpack.c.bf16 %v45_v12, %v44_v11  ;;  %v46_v23 = vld [vmem:[%s471_s0 + $0x50] sm:$0xff]  ;;  %v47_v24 = vld [vmem:[%s471_s0 + $0x58] sm:$0xff]  ;;  %v55_v28 = vpack.c.bf16 %v43_v22, %v42_v21 }
   0x7   :  { %26 = vst.msk [vmem:[#allocation2 + $0x30] sm:$0xff] %vm19_vm0, %v264_v3  ;;  %v58_v18 = vpack.c.bf16 %v49_v14, %v48_v13  ;;  %v50_v25 = vld [vmem:[%s471_s0 + $0x70] sm:$0xff]  ;;  %v51_v26 = vld [vmem:[%s471_s0 + $0x78] sm:$0xff]  ;;  %v57_v29 = vpack.c.bf16 %v47_v24, %v46_v23  ;;  %v374_v40 = vld [vmem:[%s472_s2] ss:$0 sm:$0xff] }
   0x8   :  { %114 = vmatpush.bf16.msra.mxu0 %v64_v8  ;;  %259 = vmatpush.bf16.msra.mxu1 %v64_v8  ;;  %27 = vst.msk [vmem:[#allocation2 + $0x38] sm:$0xff] %vm19_vm0, %v264_v3  ;;  %v59_v30 = vpack.c.bf16 %v51_v26, %v50_v25  ;;  %v66_v31 = vld [vmem:[#allocation2] sm:$0xff] }
   0x9   :  { %260 = vmatpush.bf16.msra.mxu2 %v64_v8  ;;  %261 = vmatpush.bf16.msra.mxu3 %v64_v8  ;;  %28 = vst.msk [vmem:[#allocation2 + $0x40] sm:$0xff] %vm19_vm0, %v264_v3  ;;  %v67_v39 = vld [vmem:[#allocation2 + $0x8] sm:$0xff] }
   0xa   :  { %29 = vst.msk [vmem:[#allocation2 + $0x48] sm:$0xff] %vm19_vm0, %v264_v3  ;;  %v68_v60 = vld [vmem:[#allocation2 + $0x10] sm:$0xff] }
   0xb   :  { %248 = vmatmul.msk.bf16.vlgmr.msra.gmra.mxu0 %vm82_vm1, %v52_v15  ;;  %250 = vmatmul.msk.bf16.vlgmr.msra.gmra.mxu1 %vm82_vm1, %v54_v16  ;;  %30 = vst.msk [vmem:[#allocation2 + $0x50] sm:$0xff] %vm19_vm0, %v264_v3  ;;  %v69_v14 = vld [vmem:[#allocation2 + $0x18] sm:$0xff] }
   0xc   :  { %252 = vmatmul.msk.bf16.vlgmr.msra.gmra.mxu2 %vm82_vm1, %v56_v17  ;;  %254 = vmatmul.msk.bf16.vlgmr.msra.gmra.mxu3 %vm82_vm1, %v58_v18  ;;  %31 = vst.msk [vmem:[#allocation2 + $0x58] sm:$0xff] %vm19_vm0, %v264_v3  ;;  %v70_v32 = vld [vmem:[#allocation2 + $0x20] sm:$0xff] }
   0xd   :  { %32 = vst.msk [vmem:[#allocation2 + $0x60] sm:$0xff] %vm19_vm0, %v264_v3  ;;  %v71_v46 = vld [vmem:[#allocation2 + $0x28] sm:$0xff] }
   0xe   :  { %33 = vst.msk [vmem:[#allocation2 + $0x68] sm:$0xff] %vm19_vm0, %v264_v3  ;;  %v72_v0 = vld [vmem:[#allocation2 + $0x30] sm:$0xff] }
   0xf   :  { %34 = vst.msk [vmem:[#allocation2 + $0x70] sm:$0xff] %vm19_vm0, %v264_v3  ;;  %v73_v18 = vld [vmem:[#allocation2 + $0x38] sm:$0xff] }
  0x10   :  { %35 = vst.msk [vmem:[#allocation2 + $0x78] sm:$0xff] %vm19_vm0, %v264_v3  ;;  %v74_v37 = vld [vmem:[#allocation2 + $0x40] sm:$0xff] }
  0x11   :  { %v75_v54 = vld [vmem:[#allocation2 + $0x48] sm:$0xff] }
  0x12   :  { %v76_v8 = vld [vmem:[#allocation2 + $0x50] sm:$0xff] }
  0x13   :  { %v77_v26 = vld [vmem:[#allocation2 + $0x58] sm:$0xff] }
  0x14   :  { %v78_v38 = vld [vmem:[#allocation2 + $0x60] sm:$0xff] }
  0x15   :  { %v79_v55 = vld [vmem:[#allocation2 + $0x68] sm:$0xff] }
  0x16   :  { %v80_v9 = vld [vmem:[#allocation2 + $0x70] sm:$0xff] }
  0x1b   :  { %249 = vmatmul.msk.bf16.gmra.mxu0 %vm82_vm1, %v53_v27  ;;  %251 = vmatmul.msk.bf16.gmra.mxu1 %vm82_vm1, %v55_v28 }
  0x1c   :  { %253 = vmatmul.msk.bf16.gmra.mxu2 %vm82_vm1, %v57_v29  ;;  %255 = vmatmul.msk.bf16.gmra.mxu3 %vm82_vm1, %v59_v30 }
  0x88   :  { %v116_v33 = vpop.f32.mrf.mxu0  ;;  %v126_v34 = vpop.f32.mrf.mxu1 }
  0x89   :  { %v156_v35 = vadd.f32 %v116_v33, %v66_v31  ;;  %v160_v36 = vadd.f32 %v126_v34, %v70_v32  ;;  %v81_v31 = vld [vmem:[#allocation2 + $0x78] sm:$0xff] }
  0x8b   :  { %173 = vst.msk [vmem:[#allocation2] sm:$0xff] %vm19_vm0, %v156_v35 }
  0x8c   :  { %177 = vst.msk [vmem:[#allocation2 + $0x20] sm:$0xff] %vm19_vm0, %v160_v36 }
  0x8f   :  { %v136_v41 = vpop.f32.mrf.mxu2  ;;  %v146_v42 = vpop.f32.mrf.mxu3 }
  0x90   :  { %v164_v43 = vadd.f32 %v136_v41, %v74_v37  ;;  %v168_v44 = vadd.f32 %v146_v42, %v78_v38  ;;  %v118_v45 = vpop.f32.mrf.mxu0  ;;  %v128_v47 = vpop.f32.mrf.mxu1 }
  0x91   :  { %v157_v48 = vadd.f32 %v118_v45, %v67_v39  ;;  %v161_v52 = vadd.f32 %v128_v47, %v71_v46 }
  0x92   :  { %v192_v49 = vld [vmem:[#allocation2] sm:$0xff]  ;;  %181 = vst.msk [vmem:[#allocation2 + $0x40] sm:$0xff] %vm19_vm0, %v164_v43 }
  0x93   :  { %v212_v50 = vadd.f32 %v374_v40, %v192_v49  ;;  %v196_v51 = vld [vmem:[#allocation2 + $0x20] sm:$0xff]  ;;  %185 = vst.msk [vmem:[#allocation2 + $0x60] sm:$0xff] %vm19_vm0, %v168_v44 }
  0x94   :  { %v216_v53 = vadd.f32 %v374_v40, %v196_v51  ;;  %174 = vst.msk [vmem:[#allocation2 + $0x8] sm:$0xff] %vm19_vm0, %v157_v48 }
  0x95   :  { %228 = vst.msk [vmem:[%s473_s3] sm:$0xff] %vm19_vm0, %v212_v50 }
  0x96   :  { %232 = vst.msk [vmem:[%s473_s3 + $0x20] sm:$0xff] %vm19_vm0, %v216_v53 }
  0x97   :  { %178 = vst.msk [vmem:[#allocation2 + $0x28] sm:$0xff] %vm19_vm0, %v161_v52  ;;  %v138_v56 = vpop.f32.mrf.mxu2  ;;  %v148_v57 = vpop.f32.mrf.mxu3 }
  0x98   :  { %v165_v58 = vadd.f32 %v138_v56, %v75_v54  ;;  %v169_v59 = vadd.f32 %v148_v57, %v79_v55  ;;  %v121_v61 = vpop.f32.mrf.mxu0  ;;  %v131_v62 = vpop.f32.mrf.mxu1 }
  0x99   :  { %v200_v63 = vld [vmem:[#allocation2 + $0x40] sm:$0xff]  ;;  %v158_v5 = vadd.f32 %v121_v61, %v68_v60  ;;  %v162_v7 = vadd.f32 %v131_v62, %v72_v0 }
  0x9a   :  { %v220_v1 = vadd.f32 %v374_v40, %v200_v63  ;;  %v204_v2 = vld [vmem:[#allocation2 + $0x60] sm:$0xff]  ;;  %182 = vst.msk [vmem:[#allocation2 + $0x48] sm:$0xff] %vm19_vm0, %v165_v58 }
  0x9b   :  { %v224_v3 = vadd.f32 %v374_v40, %v204_v2  ;;  %v193_v4 = vld [vmem:[#allocation2 + $0x8] sm:$0xff]  ;;  %186 = vst.msk [vmem:[#allocation2 + $0x68] sm:$0xff] %vm19_vm0, %v169_v59 }
  0x9c   :  { %236 = vst.msk [vmem:[%s473_s3 + $0x40] sm:$0xff] %vm19_vm0, %v220_v1  ;;  %v213_v6 = vadd.f32 %v374_v40, %v193_v4 }
  0x9d   :  { %240 = vst.msk [vmem:[%s473_s3 + $0x60] sm:$0xff] %vm19_vm0, %v224_v3 }
  0x9e   :  { %229 = vst.msk [vmem:[%s473_s3 + $0x8] sm:$0xff] %vm19_vm0, %v213_v6  ;;  %v197_v10 = vld [vmem:[#allocation2 + $0x28] sm:$0xff] }
  0x9f   :  { %v217_v11 = vadd.f32 %v374_v40, %v197_v10  ;;  %175 = vst.msk [vmem:[#allocation2 + $0x10] sm:$0xff] %vm19_vm0, %v158_v5  ;;  %v141_v12 = vpop.f32.mrf.mxu2  ;;  %v151_v13 = vpop.f32.mrf.mxu3 }
  0xa0   :  { %179 = vst.msk [vmem:[#allocation2 + $0x30] sm:$0xff] %vm19_vm0, %v162_v7  ;;  %v166_v15 = vadd.f32 %v141_v12, %v76_v8  ;;  %v170_v16 = vadd.f32 %v151_v13, %v80_v9  ;;  %v123_v17 = vpop.f32.mrf.mxu0  ;;  %v133_v19 = vpop.f32.mrf.mxu1 }
  0xa1   :  { %233 = vst.msk [vmem:[%s473_s3 + $0x28] sm:$0xff] %vm19_vm0, %v217_v11  ;;  %v201_v20 = vld [vmem:[#allocation2 + $0x48] sm:$0xff]  ;;  %v159_v23 = vadd.f32 %v123_v17, %v69_v14  ;;  %v163_v25 = vadd.f32 %v133_v19, %v73_v18 }
  0xa2   :  { %v221_v21 = vadd.f32 %v374_v40, %v201_v20  ;;  %v205_v22 = vld [vmem:[#allocation2 + $0x68] sm:$0xff]  ;;  %183 = vst.msk [vmem:[#allocation2 + $0x50] sm:$0xff] %vm19_vm0, %v166_v15 }
  0xa3   :  { %v225_v24 = vadd.f32 %v374_v40, %v205_v22  ;;  %187 = vst.msk [vmem:[#allocation2 + $0x70] sm:$0xff] %vm19_vm0, %v170_v16 }
  0xa4   :  { %237 = vst.msk [vmem:[%s473_s3 + $0x48] sm:$0xff] %vm19_vm0, %v221_v21 }
  0xa5   :  { %241 = vst.msk [vmem:[%s473_s3 + $0x68] sm:$0xff] %vm19_vm0, %v225_v24 }
  0xa6   :  { %v194_v27 = vld [vmem:[#allocation2 + $0x10] sm:$0xff]  ;;  %176 = vst.msk [vmem:[#allocation2 + $0x18] sm:$0xff] %vm19_vm0, %v159_v23 }
  0xa7   :  { %v214_v28 = vadd.f32 %v374_v40, %v194_v27  ;;  %v198_v29 = vld [vmem:[#allocation2 + $0x30] sm:$0xff]  ;;  %180 = vst.msk [vmem:[#allocation2 + $0x38] sm:$0xff] %vm19_vm0, %v163_v25  ;;  %v143_v30 = vpop.f32.mrf.mxu2  ;;  %v153_v32 = vpop.f32.mrf.mxu3 }
  0xa8   :  { %v218_v33 = vadd.f32 %v374_v40, %v198_v29  ;;  %v167_v34 = vadd.f32 %v143_v30, %v77_v26  ;;  %v171_v38 = vadd.f32 %v153_v32, %v81_v31 }
  0xa9   :  { %230 = vst.msk [vmem:[%s473_s3 + $0x10] sm:$0xff] %vm19_vm0, %v214_v28  ;;  %v202_v35 = vld [vmem:[#allocation2 + $0x50] sm:$0xff] }
  0xaa   :  { %234 = vst.msk [vmem:[%s473_s3 + $0x30] sm:$0xff] %vm19_vm0, %v218_v33  ;;  %v222_v36 = vadd.f32 %v374_v40, %v202_v35  ;;  %v206_v37 = vld [vmem:[#allocation2 + $0x70] sm:$0xff] }
  0xab   :  { %v226_v39 = vadd.f32 %v374_v40, %v206_v37  ;;  %184 = vst.msk [vmem:[#allocation2 + $0x58] sm:$0xff] %vm19_vm0, %v167_v34 }
  0xac   :  { %238 = vst.msk [vmem:[%s473_s3 + $0x50] sm:$0xff] %vm19_vm0, %v222_v36 }
  0xad   :  { %242 = vst.msk [vmem:[%s473_s3 + $0x70] sm:$0xff] %vm19_vm0, %v226_v39  ;;  %v195_v41 = vld [vmem:[#allocation2 + $0x18] sm:$0xff] }
  0xae   :  { %v215_v42 = vadd.f32 %v374_v40, %v195_v41  ;;  %v199_v43 = vld [vmem:[#allocation2 + $0x38] sm:$0xff]  ;;  %188 = vst.msk [vmem:[#allocation2 + $0x78] sm:$0xff] %vm19_vm0, %v171_v38 }
  0xaf   :  { %v219_v44 = vadd.f32 %v374_v40, %v199_v43 }
  0xb0   :  { %231 = vst.msk [vmem:[%s473_s3 + $0x18] sm:$0xff] %vm19_vm0, %v215_v42 }
  0xb1   :  { %235 = vst.msk [vmem:[%s473_s3 + $0x38] sm:$0xff] %vm19_vm0, %v219_v44 }
  0xb2   :  { %v203_v45 = vld [vmem:[#allocation2 + $0x58] sm:$0xff] }
  0xb3   :  { %v223_v46 = vadd.f32 %v374_v40, %v203_v45 }
  0xb5   :  { %239 = vst.msk [vmem:[%s473_s3 + $0x58] sm:$0xff] %vm19_vm0, %v223_v46  ;;  %v207_v47 = vld [vmem:[#allocation2 + $0x78] sm:$0xff] }
  0xb6   :  { %v227_v48 = vadd.f32 %v374_v40, %v207_v47 }
  0xb8   :  { %243 = vst.msk [vmem:[%s473_s3 + $0x78] sm:$0xff] %vm19_vm0, %v227_v48 }

</bundles_post_ra>
